<compile_context>
chip_gen: v7x
topology: tpu7x:2x2x1
jax: 0.10.0
libtpu: 0.0.40
codegen_flags: <defaults>
</compile_context>

<pallas_src>
import functools

import jax
import jax.numpy as jnp
from jax.experimental import pallas as pl
from jax.experimental.pallas import tpu as pltpu

GEM_EPS = 1e-6   # GeM clamp eps
L2_EPS = 1e-12   # F.normalize eps


def _tripletnet_kernel(x_ref, wt_ref, b_ref, p_ref, o_ref, acc_ref, *,
                       b_tile, hw_total):
    # x_ref  : (b_tile, Cin, hw_tile)  NCHW slab (spatial flattened, HW on lanes)
    # wt_ref : (Cout, Cin)             transposed 1x1-conv weight (resident)
    # b_ref  : (Cout, 1)               conv bias (resident)
    # p_ref  : (1,)  in SMEM           learnable GeM exponent p
    # o_ref  : (1, b_tile, Cout)       L2-normalized embeddings (written at last k)
    # acc_ref: (b_tile, Cout) VMEM     running sum of clamp(feat,eps)^p over HW
    k = pl.program_id(1)

    @pl.when(k == 0)
    def _init():
        acc_ref[...] = jnp.zeros_like(acc_ref)

    p = p_ref[0]                       # scalar (SMEM -> scalar path)
    wt = wt_ref[...]                   # (Cout, Cin)
    hw_tile = x_ref.shape[-1]          # static
    cout = wt.shape[0]
    # Hoisted bias broadcast: one broadcast_in_dim for the whole batch tile.
    bias_b = jnp.broadcast_to(b_ref[...], (cout, hw_tile))

    # Short static unroll over the batch tile; each iteration is a 2-D matmul
    # whose output keeps HW on the 128-lane axis (lane-dense pointwise/EUP path).
    for bi in range(b_tile):
        xb = x_ref[bi]                                                     # (Cin, hw_tile)
        fb = jnp.dot(wt, xb, preferred_element_type=jnp.float32) + bias_b  # (Cout, hw_tile)
        pb = jnp.exp(p * jnp.log(jnp.maximum(fb, GEM_EPS)))                # clamp(.,eps)^p
        acc_ref[bi] += jnp.sum(pb, axis=-1)                                # (Cout,)

    @pl.when(k == pl.num_programs(1) - 1)
    def _finalize():
        pooled = acc_ref[...] * (1.0 / float(hw_total))          # avg pool over HW
        gem = jnp.exp(jnp.log(pooled) * (1.0 / p))               # (.)^(1/p), scalar 1/p
        sq = jnp.sum(gem * gem, axis=-1, keepdims=True)          # ||gem||^2
        inv = jax.lax.rsqrt(jnp.maximum(sq, L2_EPS * L2_EPS))    # == 1/max(||gem||, 1e-12)
        o_ref[...] = (gem * inv)[None].astype(o_ref.dtype)       # (1, b_tile, Cout)


def _pick_hw_tile(hw, cin, b_tile, vmem_budget_bytes=4 << 20):
    """Largest legal HW tile: a multiple of 128 that divides HW (or the full HW
    extent when HW % 128 != 0) whose f32 x-slab stays under the per-buffer VMEM
    budget (Pallas double-buffers it)."""
    if hw % 128 != 0:
        return hw                                    # full-extent block is always legal
    max_elems = max(128, vmem_budget_bytes // (4 * cin * b_tile))
    t = min(hw, (max_elems // 128) * 128)
    while hw % t != 0:                               # 128 always divides hw here
        t -= 128
    return t


def _embed_batch(x_nchw, w, b, p, *, b_tile=4):
    """BaseNet.forward for a stacked batch: backbone -> GeM -> L2 norm."""
    B, C, H, W = x_nchw.shape
    Cout = w.shape[1]
    HW = H * W

    b_tile = max(1, min(b_tile, B))
    hw_tile = _pick_hw_tile(HW, C, b_tile)

    # Keep NCHW; flattening spatial is a free, contiguous reshape (no transpose).
    x = x_nchw.reshape(B, C, HW).astype(jnp.float32)

    # Pad batch to a multiple of b_tile (padded rows are discarded afterwards;
    # they stay finite through clamp/log/exp, so no NaNs leak in).
    pb = pl.cdiv(B, b_tile) * b_tile
    if pb != B:
        x = jnp.concatenate([x, jnp.zeros((pb - B, C, HW), jnp.float32)], axis=0)

    g = pb // b_tile
    kh = HW // hw_tile

    wt = jnp.transpose(w).astype(jnp.float32)            # (Cout, Cin) -- tiny, resident
    bias = jnp.reshape(b, (Cout, 1)).astype(jnp.float32)
    p1 = jnp.reshape(p, (1,)).astype(jnp.float32)

    kernel = functools.partial(_tripletnet_kernel, b_tile=b_tile, hw_total=HW)

    out = pl.pallas_call(
        kernel,
        out_shape=jax.ShapeDtypeStruct((g, b_tile, Cout), jnp.float32),
        grid_spec=pltpu.PrefetchScalarGridSpec(
            num_scalar_prefetch=0,
            grid=(g, kh),                                  # (batch tiles, HW tiles)
            in_specs=[
                pl.BlockSpec((b_tile, C, hw_tile), lambda i, k: (i, 0, k)),
                pl.BlockSpec((Cout, C), lambda i, k: (0, 0)),        # resident weight
                pl.BlockSpec((Cout, 1), lambda i, k: (0, 0)),        # resident bias
                pl.BlockSpec(memory_space=pltpu.MemorySpace.SMEM),   # p scalar
            ],
            out_specs=pl.BlockSpec((1, b_tile, Cout), lambda i, k: (i, 0, 0)),
            scratch_shapes=[pltpu.VMEM((b_tile, Cout), jnp.float32)],
        ),
        compiler_params=pltpu.CompilerParams(
            dimension_semantics=("parallel", "arbitrary")),
    )(x, wt, bias, p1)

    return out.reshape(pb, Cout)[:B]


@jax.jit
def tripletnet_forward(anchor, positive, negative, w, b, p):
    """TripletNet.forward: all three inputs embedded by one fused kernel call."""
    n = anchor.shape[0]
    stacked = jnp.concatenate([anchor, positive, negative], axis=0)  # (3N, C, H, W)
    emb = _embed_batch(stacked, w, b, p)
    return emb[:n], emb[n:2 * n], emb[2 * n:]


def _reference_embed(x_nchw, w, b, p):
    """Plain-JAX reference (matches the PyTorch forward) for sanity checking."""
    N, C, H, W = x_nchw.shape
    x = jnp.transpose(x_nchw, (0, 2, 3, 1)).reshape(N, H * W, C)
    feat = jnp.einsum('nsc,cd->nsd', x, w) + b[None, None, :]
    pv = p[0]
    gem = jnp.mean(jnp.clip(feat, GEM_EPS) ** pv, axis=1) ** (1.0 / pv)
    nrm = jnp.sqrt(jnp.sum(gem * gem, axis=-1, keepdims=True))
    return gem / jnp.maximum(nrm, L2_EPS)


if __name__ == "__main__":
    # Small shapes: batch=2, Cin=4, H=W=16, feature_length=Cout=32.
    key = jax.random.PRNGKey(0)
    k_a, k_p, k_n, k_w, k_b = jax.random.split(key, 5)

    N, Cin, H, W = 2, 4, 16, 16
    Cout = 32

    anchor = jax.random.normal(k_a, (N, Cin, H, W), dtype=jnp.float32)
    positive = jax.random.normal(k_p, (N, Cin, H, W), dtype=jnp.float32)
    negative = jax.random.normal(k_n, (N, Cin, H, W), dtype=jnp.float32)

    # Deterministic synthetic backbone parameters (1x1 conv), GeM p=3.
    w = jax.random.normal(k_w, (Cin, Cout), dtype=jnp.float32) * 0.1
    b = jax.random.normal(k_b, (Cout,), dtype=jnp.float32) * 0.01
    p = jnp.ones((1,), dtype=jnp.float32) * 3.0  # nn.Parameter(torch.ones(1)*p)

    # TODO(synk): register_hook / activations_hook (gradient capture) is
    # backward-pass machinery with no forward-pass effect; omitted.

    out_a, out_p, out_n = tripletnet_forward(anchor, positive, negative, w, b, p)
    jax.block_until_ready((out_a, out_p, out_n))

    # Correctness check of all three embeddings against a pure-JAX reference.
    import numpy as np
    for got, x_in in ((out_a, anchor), (out_p, positive), (out_n, negative)):
        ref = _reference_embed(x_in, w, b, p)
        np.testing.assert_allclose(np.asarray(got), np.asarray(ref),
                                   rtol=1e-4, atol=1e-5)
    assert out_a.shape == (N, Cout) and out_p.shape == (N, Cout) and out_n.shape == (N, Cout)

    print("KERNEL_OK")
</pallas_src>

<mosaic_0001>
module attributes {stable_mosaic.version = 11 : i64} {
  func.func @_tripletnet_kernel(%arg0: i32, %arg1: i32, %arg2: memref<4x4x256xf32, #tpu.memory_space<vmem>>, %arg3: memref<32x4xf32, #tpu.memory_space<vmem>>, %arg4: memref<32x1xf32, #tpu.memory_space<vmem>>, %arg5: memref<1xf32, #tpu.memory_space<smem>>, %arg6: memref<1x4x32xf32, #tpu.memory_space<vmem>>, %arg7: memref<4x32xf32, #tpu.memory_space<vmem>>) attributes {dimension_semantics = [#tpu.dimension_semantics<parallel>, #tpu.dimension_semantics<arbitrary>], iteration_bounds = array<i64: 2, 1>, scalar_prefetch = 0 : i64, scratch_operands = 1 : i64, tpu.core_type = #tpu.core_type<tc>, window_params = [{transform_indices = @transform_0, window_bounds = array<i64: 4, 4, 256>}, {pipeline_mode = #tpu.pipeline_mode<synchronous>, transform_indices = @transform_1, window_bounds = array<i64: 32, 4>}, {pipeline_mode = #tpu.pipeline_mode<synchronous>, transform_indices = @transform_2, window_bounds = array<i64: 32, 1>}, {transform_indices = @transform_3, window_bounds = array<i64: 1>}, {transform_indices = @transform_4, window_bounds = array<i64: 1, 4, 32>}]} {
    %c0_i32 = arith.constant 0 : i32
    %0 = arith.cmpi eq, %arg1, %c0_i32 : i32
    %1 = arith.extui %0 : i1 to i32
    %c0_i32_0 = arith.constant 0 : i32
    %2 = arith.cmpi ne, %1, %c0_i32_0 : i32
    scf.if %2 {
      %cst_43 = arith.constant 0.000000e+00 : f32
      %79 = vector.broadcast %cst_43 : f32 to vector<4x32xf32>
      %c0_44 = arith.constant 0 : index
      %c0_45 = arith.constant 0 : index
      %80 = vector.load %arg7[%c0_44, %c0_45] : memref<4x32xf32, #tpu.memory_space<vmem>>, vector<4x32xf32>
      tpu.vector_store %arg7[%c0_44, %c0_45], %79 {strides = array<i32>} : memref<4x32xf32, #tpu.memory_space<vmem>>, vector<4x32xf32>,
    } else {
    }
    %c0 = arith.constant 0 : index
    %3 = memref.load %arg5[%c0] : memref<1xf32, #tpu.memory_space<smem>>
    %c0_1 = arith.constant 0 : index
    %c0_2 = arith.constant 0 : index
    %4 = vector.load %arg3[%c0_1, %c0_2] : memref<32x4xf32, #tpu.memory_space<vmem>>, vector<32x4xf32>
    %c0_3 = arith.constant 0 : index
    %c0_4 = arith.constant 0 : index
    %5 = vector.load %arg4[%c0_3, %c0_4] : memref<32x1xf32, #tpu.memory_space<vmem>>, vector<32x1xf32>
    %6 = vector.shape_cast %5 : vector<32x1xf32> to vector<32x1xf32>
    %7 = vector.broadcast %6 : vector<32x1xf32> to vector<32x256xf32>
    %c0_5 = arith.constant 0 : index
    %c0_6 = arith.constant 0 : index
    %c0_7 = arith.constant 0 : index
    %8 = vector.load %arg2[%c0_5, %c0_6, %c0_7] : memref<4x4x256xf32, #tpu.memory_space<vmem>>, vector<1x4x256xf32>
    %9 = vector.shape_cast %8 : vector<1x4x256xf32> to vector<4x256xf32>
    %cst = arith.constant dense<0.000000e+00> : vector<32x256xf32>
    %10 = tpu.matmul %4, %9, %cst {dimension_numbers = #tpu.dot_dimension_numbers<[1], [0], [0], [1], [0, 0, 1, 1], [], []>} : vector<32x4xf32>, vector<4x256xf32>, vector<32x256xf32> -> vector<32x256xf32>
    %11 = arith.addf %10, %7 : vector<32x256xf32>
    %cst_8 = arith.constant 9.99999997E-7 : f32
    %12 = vector.broadcast %cst_8 : f32 to vector<32x256xf32>
    %13 = arith.maximumf %11, %12 : vector<32x256xf32>
    %14 = math.log %13 : vector<32x256xf32>
    %15 = vector.broadcast %3 : f32 to vector<32x256xf32>
    %16 = arith.mulf %15, %14 : vector<32x256xf32>
    %17 = math.exp %16 : vector<32x256xf32>
    %c0_9 = arith.constant 0 : index
    %c0_10 = arith.constant 0 : index
    %18 = vector.load %arg7[%c0_9, %c0_10] : memref<4x32xf32, #tpu.memory_space<vmem>>, vector<1x32xf32>
    %19 = vector.shape_cast %18 : vector<1x32xf32> to vector<32xf32>
    %cst_11 = arith.constant dense<0.000000e+00> : vector<32xf32>
    %20 = vector.multi_reduction <add>, %17, %cst_11 [1] : vector<32x256xf32> to vector<32xf32>
    %21 = arith.addf %19, %20 : vector<32xf32>
    %c0_12 = arith.constant 0 : index
    %c0_13 = arith.constant 0 : index
    %22 = vector.load %arg7[%c0_12, %c0_13] : memref<4x32xf32, #tpu.memory_space<vmem>>, vector<1x32xf32>
    %23 = vector.shape_cast %22 : vector<1x32xf32> to vector<32xf32>
    %24 = vector.shape_cast %21 : vector<32xf32> to vector<1x32xf32>
    tpu.vector_store %arg7[%c0_12, %c0_13], %24 {strides = array<i32>} : memref<4x32xf32, #tpu.memory_space<vmem>>, vector<1x32xf32>,
    %c1 = arith.constant 1 : index
    %c0_14 = arith.constant 0 : index
    %c0_15 = arith.constant 0 : index
    %25 = vector.load %arg2[%c1, %c0_14, %c0_15] : memref<4x4x256xf32, #tpu.memory_space<vmem>>, vector<1x4x256xf32>
    %26 = vector.shape_cast %25 : vector<1x4x256xf32> to vector<4x256xf32>
    %cst_16 = arith.constant dense<0.000000e+00> : vector<32x256xf32>
    %27 = tpu.matmul %4, %26, %cst_16 {dimension_numbers = #tpu.dot_dimension_numbers<[1], [0], [0], [1], [0, 0, 1, 1], [], []>} : vector<32x4xf32>, vector<4x256xf32>, vector<32x256xf32> -> vector<32x256xf32>
    %28 = arith.addf %27, %7 : vector<32x256xf32>
    %cst_17 = arith.constant 9.99999997E-7 : f32
    %29 = vector.broadcast %cst_17 : f32 to vector<32x256xf32>
    %30 = arith.maximumf %28, %29 : vector<32x256xf32>
    %31 = math.log %30 : vector<32x256xf32>
    %32 = vector.broadcast %3 : f32 to vector<32x256xf32>
    %33 = arith.mulf %32, %31 : vector<32x256xf32>
    %34 = math.exp %33 : vector<32x256xf32>
    %c1_18 = arith.constant 1 : index
    %c0_19 = arith.constant 0 : index
    %35 = vector.load %arg7[%c1_18, %c0_19] : memref<4x32xf32, #tpu.memory_space<vmem>>, vector<1x32xf32>
    %36 = vector.shape_cast %35 : vector<1x32xf32> to vector<32xf32>
    %cst_20 = arith.constant dense<0.000000e+00> : vector<32xf32>
    %37 = vector.multi_reduction <add>, %34, %cst_20 [1] : vector<32x256xf32> to vector<32xf32>
    %38 = arith.addf %36, %37 : vector<32xf32>
    %c1_21 = arith.constant 1 : index
    %c0_22 = arith.constant 0 : index
    %39 = vector.load %arg7[%c1_21, %c0_22] : memref<4x32xf32, #tpu.memory_space<vmem>>, vector<1x32xf32>
    %40 = vector.shape_cast %39 : vector<1x32xf32> to vector<32xf32>
    %41 = vector.shape_cast %38 : vector<32xf32> to vector<1x32xf32>
    tpu.vector_store %arg7[%c1_21, %c0_22], %41 {strides = array<i32>} : memref<4x32xf32, #tpu.memory_space<vmem>>, vector<1x32xf32>,
    %c2 = arith.constant 2 : index
    %c0_23 = arith.constant 0 : index
    %c0_24 = arith.constant 0 : index
    %42 = vector.load %arg2[%c2, %c0_23, %c0_24] : memref<4x4x256xf32, #tpu.memory_space<vmem>>, vector<1x4x256xf32>
    %43 = vector.shape_cast %42 : vector<1x4x256xf32> to vector<4x256xf32>
    %cst_25 = arith.constant dense<0.000000e+00> : vector<32x256xf32>
    %44 = tpu.matmul %4, %43, %cst_25 {dimension_numbers = #tpu.dot_dimension_numbers<[1], [0], [0], [1], [0, 0, 1, 1], [], []>} : vector<32x4xf32>, vector<4x256xf32>, vector<32x256xf32> -> vector<32x256xf32>
    %45 = arith.addf %44, %7 : vector<32x256xf32>
    %cst_26 = arith.constant 9.99999997E-7 : f32
    %46 = vector.broadcast %cst_26 : f32 to vector<32x256xf32>
    %47 = arith.maximumf %45, %46 : vector<32x256xf32>
    %48 = math.log %47 : vector<32x256xf32>
    %49 = vector.broadcast %3 : f32 to vector<32x256xf32>
    %50 = arith.mulf %49, %48 : vector<32x256xf32>
    %51 = math.exp %50 : vector<32x256xf32>
    %c2_27 = arith.constant 2 : index
    %c0_28 = arith.constant 0 : index
    %52 = vector.load %arg7[%c2_27, %c0_28] : memref<4x32xf32, #tpu.memory_space<vmem>>, vector<1x32xf32>
    %53 = vector.shape_cast %52 : vector<1x32xf32> to vector<32xf32>
    %cst_29 = arith.constant dense<0.000000e+00> : vector<32xf32>
    %54 = vector.multi_reduction <add>, %51, %cst_29 [1] : vector<32x256xf32> to vector<32xf32>
    %55 = arith.addf %53, %54 : vector<32xf32>
    %c2_30 = arith.constant 2 : index
    %c0_31 = arith.constant 0 : index
    %56 = vector.load %arg7[%c2_30, %c0_31] : memref<4x32xf32, #tpu.memory_space<vmem>>, vector<1x32xf32>
    %57 = vector.shape_cast %56 : vector<1x32xf32> to vector<32xf32>
    %58 = vector.shape_cast %55 : vector<32xf32> to vector<1x32xf32>
    tpu.vector_store %arg7[%c2_30, %c0_31], %58 {strides = array<i32>} : memref<4x32xf32, #tpu.memory_space<vmem>>, vector<1x32xf32>,
    %c3 = arith.constant 3 : index
    %c0_32 = arith.constant 0 : index
    %c0_33 = arith.constant 0 : index
    %59 = vector.load %arg2[%c3, %c0_32, %c0_33] : memref<4x4x256xf32, #tpu.memory_space<vmem>>, vector<1x4x256xf32>
    %60 = vector.shape_cast %59 : vector<1x4x256xf32> to vector<4x256xf32>
    %cst_34 = arith.constant dense<0.000000e+00> : vector<32x256xf32>
    %61 = tpu.matmul %4, %60, %cst_34 {dimension_numbers = #tpu.dot_dimension_numbers<[1], [0], [0], [1], [0, 0, 1, 1], [], []>} : vector<32x4xf32>, vector<4x256xf32>, vector<32x256xf32> -> vector<32x256xf32>
    %62 = arith.addf %61, %7 : vector<32x256xf32>
    %cst_35 = arith.constant 9.99999997E-7 : f32
    %63 = vector.broadcast %cst_35 : f32 to vector<32x256xf32>
    %64 = arith.maximumf %62, %63 : vector<32x256xf32>
    %65 = math.log %64 : vector<32x256xf32>
    %66 = vector.broadcast %3 : f32 to vector<32x256xf32>
    %67 = arith.mulf %66, %65 : vector<32x256xf32>
    %68 = math.exp %67 : vector<32x256xf32>
    %c3_36 = arith.constant 3 : index
    %c0_37 = arith.constant 0 : index
    %69 = vector.load %arg7[%c3_36, %c0_37] : memref<4x32xf32, #tpu.memory_space<vmem>>, vector<1x32xf32>
    %70 = vector.shape_cast %69 : vector<1x32xf32> to vector<32xf32>
    %cst_38 = arith.constant dense<0.000000e+00> : vector<32xf32>
    %71 = vector.multi_reduction <add>, %68, %cst_38 [1] : vector<32x256xf32> to vector<32xf32>
    %72 = arith.addf %70, %71 : vector<32xf32>
    %c3_39 = arith.constant 3 : index
    %c0_40 = arith.constant 0 : index
    %73 = vector.load %arg7[%c3_39, %c0_40] : memref<4x32xf32, #tpu.memory_space<vmem>>, vector<1x32xf32>
    %74 = vector.shape_cast %73 : vector<1x32xf32> to vector<32xf32>
    %75 = vector.shape_cast %72 : vector<32xf32> to vector<1x32xf32>
    tpu.vector_store %arg7[%c3_39, %c0_40], %75 {strides = array<i32>} : memref<4x32xf32, #tpu.memory_space<vmem>>, vector<1x32xf32>,
    %c0_i32_41 = arith.constant 0 : i32
    %76 = arith.cmpi eq, %arg1, %c0_i32_41 : i32
    %77 = arith.extui %76 : i1 to i32
    %c0_i32_42 = arith.constant 0 : i32
    %78 = arith.cmpi ne, %77, %c0_i32_42 : i32
    scf.if %78 {
      %c0_43 = arith.constant 0 : index
      %c0_44 = arith.constant 0 : index
      %79 = vector.load %arg7[%c0_43, %c0_44] : memref<4x32xf32, #tpu.memory_space<vmem>>, vector<4x32xf32>
      %cst_45 = arith.constant 3.906250e-03 : f32
      %80 = vector.broadcast %cst_45 : f32 to vector<4x32xf32>
      %81 = arith.mulf %79, %80 : vector<4x32xf32>
      %82 = math.log %81 : vector<4x32xf32>
      %cst_46 = arith.constant 1.000000e+00 : f32
      %83 = arith.divf %cst_46, %3 : f32
      %84 = vector.broadcast %83 : f32 to vector<4x32xf32>
      %85 = arith.mulf %82, %84 : vector<4x32xf32>
      %86 = math.exp %85 : vector<4x32xf32>
      %87 = arith.mulf %86, %86 : vector<4x32xf32>
      %cst_47 = arith.constant dense<0.000000e+00> : vector<4xf32>
      %88 = vector.multi_reduction <add>, %87, %cst_47 [1] : vector<4x32xf32> to vector<4xf32>
      %89 = vector.shape_cast %88 : vector<4xf32> to vector<4x1xf32>
      %cst_48 = arith.constant 1.000000e-24 : f32
      %90 = vector.broadcast %cst_48 : f32 to vector<4x1xf32>
      %91 = arith.maximumf %89, %90 : vector<4x1xf32>
      %92 = math.rsqrt %91 : vector<4x1xf32>
      %93 = vector.broadcast %92 : vector<4x1xf32> to vector<4x32xf32>
      %94 = arith.mulf %86, %93 : vector<4x32xf32>
      %95 = vector.shape_cast %94 : vector<4x32xf32> to vector<1x4x32xf32>
      %c0_49 = arith.constant 0 : index
      %c0_50 = arith.constant 0 : index
      %c0_51 = arith.constant 0 : index
      %96 = vector.load %arg6[%c0_49, %c0_50, %c0_51] : memref<1x4x32xf32, #tpu.memory_space<vmem>>, vector<1x4x32xf32>
      tpu.vector_store %arg6[%c0_49, %c0_50, %c0_51], %95 {strides = array<i32>} : memref<1x4x32xf32, #tpu.memory_space<vmem>>, vector<1x4x32xf32>,
    } else {
    }
    return
  }
  func.func @transform_0(%arg0: i32, %arg1: i32) -> (i32, i32, i32) {
    %c0_i32 = arith.constant 0 : i32
    %c0_i32_0 = arith.constant 0 : i32
    return %arg0, %c0_i32, %arg1 : i32, i32, i32
  }
  func.func @transform_1(%arg0: i32, %arg1: i32) -> (i32, i32) {
    %c0_i32 = arith.constant 0 : i32
    %c0_i32_0 = arith.constant 0 : i32
    %c0_i32_1 = arith.constant 0 : i32
    return %c0_i32, %c0_i32_0 : i32, i32
  }
  func.func @transform_2(%arg0: i32, %arg1: i32) -> (i32, i32) {
    %c0_i32 = arith.constant 0 : i32
    %c0_i32_0 = arith.constant 0 : i32
    %c0_i32_1 = arith.constant 0 : i32
    return %c0_i32, %c0_i32_0 : i32, i32
  }
  func.func @transform_3(%arg0: i32, %arg1: i32) -> i32 {
    %c0_i32 = arith.constant 0 : i32
    %c0_i32_0 = arith.constant 0 : i32
    return %c0_i32 : i32
  }
  func.func @transform_4(%arg0: i32, %arg1: i32) -> (i32, i32, i32) {
    %c0_i32 = arith.constant 0 : i32
    %c0_i32_0 = arith.constant 0 : i32
    %c0_i32_1 = arith.constant 0 : i32
    return %arg0, %c0_i32, %c0_i32_0 : i32, i32, i32
  }
}

</mosaic_0001>

<bundles_post_ra>
// kernel: tripletnet_forward.1
= control target key start
LH: loop header
LB: loop body
LE: loop exit
PB: predicated region body
PF: predicated region fallthrough
CT: control target
= control target key end

     0   :  { %s1377_s17 = smov 0   ;;  %s1379_s18 = smov 0   ;;  %s1610_s0 = inlined_call_operand.vmem [shape: f32[8,4,256], index: 0, kind: input, shape index: {}]   ;;  %s1611_s1 = inlined_call_operand.vmem [shape: f32[32,4], index: 1, kind: input, shape index: {}]   ;;  %s1612_s2 = inlined_call_operand.vmem [shape: f32[32,1], index: 2, kind: input, shape index: {}]   ;;  %s1613_s3 = inlined_call_operand.<no memory space> [shape: f32[1], index: 3, kind: input, shape index: {}]   ;;  %s1614_s4 = inlined_call_operand.vmem [shape: f32[2,4,32], index: 4, kind: output, shape index: {}]  }
   0x1   :  { %9 = sst [smem:[#allocation3]] %s1613_s3  ;;  %s1381_s19 = smov 0  }
   0x2 LB: > { %s27_s3 = sadd.s32 1, %s1341_s18  ;;  %p1118_p0 = scmp.ge.s32.totalorder %s1345_s19, 1  ;;  %s1345_s19 = sphi %s1381_s19, %s15_s19   ;;  %s1341_s18 = sphi %s1379_s18, %s1616_s18   ;;  %s1337_s17 = sphi %s1377_s17, %s1615_s17  }
   0x3   : > { %p29_p1 = scmp.ge.s32.totalorder %s27_s3, 2  ;;  %p184_p2 = scmp.lt.s32.totalorder %s1345_s19, 3 }
   0x5   : > { %s1618_s3 = smov (%p29_p1, %s27_s3), 0  ;;  %p185_p3 = pnand %p1118_p0, %p184_p2 }
   0x6   : > { %s1119_s20 = sshll.u32 (!%p185_p3), %s1337_s17, 2  ;;  %v1347_v0 = vmov (!%p185_p3), 0.0   ;;  %v241_v1 = vld [vmem:[%s1612_s2] sm:$0xff] (!%p185_p3)  ;;  %v1348_v2 = vmov (!%p185_p3), 0   ;;  %v243_v3 = vld [vmem:[%s1612_s2 + $0x10] sm:$0xff] (!%p185_p3)  ;;  %v242_v4 = vld [vmem:[%s1612_s2 + $0x8] sm:$0xff] (!%p185_p3) }
   0x7   : > { %188 = sbr.rel (%p185_p3) target bundleno = 692 (0x2b4), region = 36  ;;  %p216_p4 = scmp.lt.s32.totalorder (!%p185_p3), %s1119_s20, 7  ;;  %350 = vmatprep.mubr.f32.mxu0 (!%p185_p3), %v1347_v0  ;;  %544 = vmatprep.mubr.f32.mxu1 (!%p185_p3), %v1347_v0  ;;  %v244_v5 = vld [vmem:[%s1612_s2 + $0x18] sm:$0xff] (!%p185_p3)  ;;  %vm281_vm0 = vcmask (!%p185_p3), 1043456   ;;  %v237_v12 = vld [vmem:[%s1611_s1] sm:$0xff] (!%p185_p3)  ;;  %vm268_vm1 = vcmask (!%p185_p3), 31744  }
   0x8   : > { %1181 = vset.pattern.permute.xlu0 (!%p185_p3), %v1348_v2  ;;  %1182 = vset.pattern.permute.xlu1 (!%p185_p3), %v1348_v2  ;;  %v238_v15 = vld [vmem:[%s1611_s1 + $0x8] sm:$0xff] (!%p185_p3)  ;;  %v239_v16 = vld [vmem:[%s1611_s1 + $0x10] sm:$0xff] (!%p185_p3)  ;;  %v240_v17 = vld [vmem:[%s1611_s1 + $0x18] sm:$0xff] (!%p185_p3)  ;;  %s1479_s15 = sld [smem:[#allocation3]] (!%p185_p3)  ;;  %vm234_vm2 = vcmask (!%p185_p3), 257024   ;;  %vm452_vm3 = vcmask (!%p185_p3), 130112  }
   0x9   : > { %247 = vperm.xlu0 (!%p185_p3), %1181, %v241_v1   ;;  %257 = vperm.xlu1 (!%p185_p3), %1182, %v243_v3   ;;  %235 = vst.msk [vmem:[#allocation2] sm:$0xf] (!%p185_p3), %vm234_vm2, %v1347_v0  ;;  %vm459_vm4 = vcmask (!%p185_p3), 195712   ;;  %vm466_vm5 = vcmask (!%p185_p3), 261312   ;;  %vm470_vm6 = vcmask (!%p185_p3), 253952   ;;  %p226_p5 = scmp.lt.s32.totalorder (!%p185_p3), %s1337_s17, 1 }
   0xd   : > { %252 = vperm.xlu0 (!%p185_p3), %1181, %v242_v4   ;;  %262 = vperm.xlu1 (!%p185_p3), %1182, %v244_v5  }
   0xe   : > { %s1620_s20 = smov (!%p216_p4, %s1119_s20), 7  ;;  %v1492_v1 = vstv %s1479_s15  ;;  %s1622_s17 = smov (!%p226_p5, %s1337_s17), 1 }
   0xf   : > { %s1152_s29 = sshll.u32 %s1620_s20, 3  ;;  %s1122_s20 = sshll.u32 %s1622_s17, 2 }
  0x10   : > { %s223_s6 = scalar_lea.vmem %s1610_s0, %s1152_s29  ;;  %s229_s23 = scalar_lea.vmem %s1614_s4, %s1122_s20 }
  0x11   : > { %v265_v6 = vld [vmem:[%s223_s6] sm:$0xff]  ;;  %v1129_v7 = vld [vmem:[%s223_s6 + $0x8] sm:$0xff]  ;;  %v1136_v8 = vld [vmem:[%s223_s6 + $0x10] sm:$0xff] }
  0x12   : > { %v267_v9 = vcombine.high %v265_v6, %v265_v6  ;;  %v475_v10 = vcombine.high %v1129_v7, %v1129_v7  ;;  %v1143_v11 = vld [vmem:[%s223_s6 + $0x18] sm:$0xff]  ;;  %v659_v13 = vcombine.high %v1136_v8, %v1136_v8 }
  0x13   : > { %v843_v14 = vcombine.high %v1143_v11, %v1143_v11 }
  0x14   : > { %1123 = vmatprep.subr.msk.mxu0 %vm281_vm0, %v267_v9  ;;  %1130 = vmatprep.subr.msk.mxu1 %vm281_vm0, %v475_v10 }
  0x15   : > { %1124 = vmatpush1.msk.msra.mxu0 %vm281_vm0, %v265_v6  ;;  %1131 = vmatpush1.msk.msra.mxu1 %vm281_vm0, %v1129_v7 }
  0x16   : > { %1125 = vmatmul.mubr.msk.f32.vlgmr.msra.gmra.mrb[0].mxu0 %vm268_vm1, %v237_v12  ;;  %1132 = vmatmul.mubr.msk.f32.vlgmr.msra.gmra.mrb[0].mxu1 %vm268_vm1, %v237_v12 }
  0x17   : > { %1137 = vmatprep.subr.msk.mxu0 %vm281_vm0, %v659_v13  ;;  %356 = vmatprep.mubr.f32.mxu0 %v1347_v0 }
  0x18   : > { %1138 = vmatpush1.msk.msra.mxu0 %vm281_vm0, %v1136_v8  ;;  %550 = vmatprep.mubr.f32.mxu1 %v1347_v0 }
  0x19   : > { %1144 = vmatprep.subr.msk.mxu1 %vm281_vm0, %v843_v14 }
  0x1a   : > { %1126 = vmatmul.mubr.msk.f32.gmra.mrb[2].mxu0 %vm268_vm1, %v238_v15  ;;  %1133 = vmatmul.mubr.msk.f32.gmra.mrb[2].mxu1 %vm268_vm1, %v238_v15 }
  0x1b   : > { %1145 = vmatpush1.msk.msra.mxu1 %vm281_vm0, %v1143_v11  ;;  %362 = vmatprep.mubr.f32.mxu0 %v1347_v0 }
  0x1c   : > { %556 = vmatprep.mubr.f32.mxu1 %v1347_v0 }
  0x1e   : > { %1127 = vmatmul.mubr.msk.f32.gmra.mrb[4].mxu0 %vm268_vm1, %v239_v16  ;;  %1134 = vmatmul.mubr.msk.f32.gmra.mrb[4].mxu1 %vm268_vm1, %v239_v16 }
  0x1f   : > { %368 = vmatprep.mubr.f32.mxu0 %v1347_v0  ;;  %562 = vmatprep.mubr.f32.mxu1 %v1347_v0 }
  0x22   : > { %1128 = vmatmul.mubr.msk.f32.gmra.mrb[6].mxu0 %vm268_vm1, %v240_v17  ;;  %1135 = vmatmul.mubr.msk.f32.gmra.mrb[6].mxu1 %vm268_vm1, %v240_v17 }
  0x23   : > { %728 = vmatprep.mubr.f32.mxu0 %v1347_v0  ;;  %912 = vmatprep.mubr.f32.mxu1 %v1347_v0 }
  0x26   : > { %1139 = vmatmul.mubr.msk.f32.vlgmr.msra.gmra.mrb[8].mxu0 %vm268_vm1, %v237_v12  ;;  %1146 = vmatmul.mubr.msk.f32.vlgmr.msra.gmra.mrb[8].mxu1 %vm268_vm1, %v237_v12 }
  0x27   : > { %734 = vmatprep.mubr.f32.mxu0 %v1347_v0  ;;  %918 = vmatprep.mubr.f32.mxu1 %v1347_v0 }
  0x2a   : > { %1140 = vmatmul.mubr.msk.f32.gmra.mrb[10].mxu0 %vm268_vm1, %v238_v15  ;;  %1147 = vmatmul.mubr.msk.f32.gmra.mrb[10].mxu1 %vm268_vm1, %v238_v15 }
  0x2b   : > { %740 = vmatprep.mubr.f32.mxu0 %v1347_v0  ;;  %924 = vmatprep.mubr.f32.mxu1 %v1347_v0 }
  0x2e   : > { %1141 = vmatmul.mubr.msk.f32.gmra.mrb[12].mxu0 %vm268_vm1, %v239_v16  ;;  %1148 = vmatmul.mubr.msk.f32.gmra.mrb[12].mxu1 %vm268_vm1, %v239_v16 }
  0x2f   : > { %746 = vmatprep.mubr.f32.mxu0 %v1347_v0  ;;  %930 = vmatprep.mubr.f32.mxu1 %v1347_v0 }
  0x32   : > { %1142 = vmatmul.mubr.msk.f32.gmra.mrb[14].mxu0 %vm268_vm1, %v240_v17  ;;  %1149 = vmatmul.mubr.msk.f32.gmra.mrb[14].mxu1 %vm268_vm1, %v240_v17 }
  0x88   : > { %v1465_v18 = vpop.permute.xlu0 %247  ;;  %v1473_v30 = vpop.permute.xlu1 %257 }
  0x8c   : > { %v1471_v29 = vpop.permute.xlu0 %252  ;;  %v1484_v52 = vpop.permute.xlu1 %262 }
  0xe9   : > { %v352_v19 = vpop.f32.mrb[0].mxu0  ;;  %v546_v20 = vpop.f32.mrb[0].mxu1 }
  0xea   : > { %v353_v21 = vadd.f32 %v352_v19, %v1465_v18  ;;  %v354_v22 = vpop.f32.mrb[1].mxu0  ;;  %v547_v23 = vadd.f32 %v546_v20, %v1465_v18  ;;  %v548_v24 = vpop.f32.mrb[1].mxu1 }
  0xeb   : > { %v355_v25 = vadd.f32 %v354_v22, %v1465_v18  ;;  %v549_v26 = vadd.f32 %v548_v24, %v1465_v18 }
  0xec   : > { %v375_v27 = vmax.f32 %v353_v21, 1e-06  ;;  %v569_v28 = vmax.f32 %v547_v23, 1e-06 }
  0xed   : > { %v376_v31 = vmax.f32 %v355_v25, 1e-06  ;;  %v570_v32 = vmax.f32 %v549_v26, 1e-06  ;;  %v358_v33 = vpop.f32.mrb[2].mxu0  ;;  %v552_v34 = vpop.f32.mrb[2].mxu1 }
  0xee   : > { %1187 = vlog2.f32 %v375_v27  ;;  %v359_v35 = vadd.f32 %v358_v33, %v1471_v29  ;;  %v553_v36 = vadd.f32 %v552_v34, %v1471_v29  ;;  %v360_v37 = vpop.f32.mrb[3].mxu0  ;;  %v554_v38 = vpop.f32.mrb[3].mxu1 }
  0xef   : > { %1189 = vlog2.f32 %v376_v31  ;;  %v361_v39 = vadd.f32 %v360_v37, %v1471_v29  ;;  %v555_v40 = vadd.f32 %v554_v38, %v1471_v29 }
  0xf0   : > { %1191 = vlog2.f32 %v569_v28  ;;  %v377_v41 = vmax.f32 %v359_v35, 1e-06  ;;  %v571_v42 = vmax.f32 %v553_v36, 1e-06 }
  0xf1   : > { %1193 = vlog2.f32 %v570_v32  ;;  %v378_v43 = vmax.f32 %v361_v39, 1e-06  ;;  %v572_v44 = vmax.f32 %v555_v40, 1e-06  ;;  %v364_v45 = vpop.f32.mrb[4].mxu0  ;;  %v558_v46 = vpop.f32.mrb[4].mxu1 }
  0xf2   : > { %1195 = vlog2.f32 %v377_v41  ;;  %v366_v47 = vpop.f32.mrb[5].mxu0  ;;  %v559_v48 = vadd.f32 %v558_v46, %v1473_v30  ;;  %v560_v49 = vpop.f32.mrb[5].mxu1  ;;  %v365_v58 = vadd.f32 %v364_v45, %v1473_v30 }
  0xf3   : > { %1197 = vlog2.f32 %v571_v42  ;;  %v367_v50 = vadd.f32 %v366_v47, %v1473_v30  ;;  %v561_v51 = vadd.f32 %v560_v49, %v1473_v30 }
  0xf4   : > { %1199 = vlog2.f32 %v378_v43  ;;  %v573_v53 = vmax.f32 %v559_v48, 1e-06  ;;  %v379_v6 = vmax.f32 %v365_v58, 1e-06 }
  0xf5   : > { %1201 = vlog2.f32 %v572_v44  ;;  %v380_v54 = vmax.f32 %v367_v50, 1e-06  ;;  %v1486_v55 = vpop.f32.mrb[6].mxu0  ;;  %v574_v56 = vmax.f32 %v561_v51, 1e-06  ;;  %v564_v57 = vpop.f32.mrb[6].mxu1 }
  0xf6   : > { %1203 = vlog2.f32 %v573_v53  ;;  %v372_v59 = vpop.f32.mrb[7].mxu0  ;;  %v565_v60 = vadd.f32 %v564_v57, %v1484_v52  ;;  %v566_v61 = vpop.f32.mrb[7].mxu1 }
  0xf7   : > { %1205 = vlog2.f32 %v380_v54  ;;  %v567_v62 = vadd.f32 %v566_v61, %v1484_v52  ;;  %v1496_v14 = vadd.f32 %v372_v59, %v1484_v52 }
  0xf8   : > { %v1188_v63 = vpop.eup %1187  ;;  %1207 = vlog2.f32 %v574_v56  ;;  %v575_v2 = vmax.f32 %v565_v60, 1e-06 }
  0xf9   : > { %v1190_v3 = vpop.eup %1189  ;;  %v384_v4 = vmul.f32 0.6931472, %v1188_v63  ;;  %v576_v5 = vmax.f32 %v567_v62, 1e-06  ;;  %v730_v9 = vpop.f32.mrb[8].mxu0 }
  0xfa   : > { %v1192_v7 = vpop.eup %1191  ;;  %v386_v8 = vmul.f32 0.6931472, %v1190_v3  ;;  %1209 = vlog2.f32 %v575_v2  ;;  %v914_v10 = vpop.f32.mrb[8].mxu1  ;;  %v1509_v32 = vadd.f32 %v730_v9, %v1465_v18  ;;  %v382_v3 = vmax.f32 %v1496_v14, 1e-06 }
  0xfb   : > { %v1194_v11 = vpop.eup %1193  ;;  %v400_v12 = vmul.f32 %v1492_v1, %v384_v4  ;;  %v578_v13 = vmul.f32 0.6931472, %v1192_v7  ;;  %v1498_v15 = vpop.f32.mrb[9].mxu0  ;;  %1211 = vlog2.f32 %v576_v5  ;;  %v1504_v21 = vadd.f32 %v914_v10, %v1465_v18 }
  0xfc   : > { %v1500_v16 = vpop.f32.mrb[9].mxu1  ;;  %v1196_v17 = vpop.eup %1195  ;;  %v401_v19 = vmul.f32 %v1492_v1, %v386_v8  ;;  %v580_v20 = vmul.f32 0.6931472, %v1194_v11  ;;  %1213 = vlog2.f32 %v379_v6  ;;  %v753_v10 = vmax.f32 %v1509_v32, 1e-06 }
  0xfd   : > { %v1198_v22 = vpop.eup %1197  ;;  %v408_v23 = vmul.f32 1.442695, %v400_v12  ;;  %v593_v24 = vmul.f32 %v578_v13, %v1492_v1  ;;  %v388_v25 = vmul.f32 0.6931472, %v1196_v17  ;;  %v736_v37 = vpop.f32.mrb[10].mxu0  ;;  %v733_v11 = vadd.f32 %v1498_v15, %v1465_v18 }
  0xfe   : > { %v1200_v26 = vpop.eup %1199  ;;  %v410_v27 = vmul.f32 1.442695, %v401_v19  ;;  %v594_v28 = vmul.f32 %v580_v20, %v1492_v1  ;;  %v582_v31 = vmul.f32 0.6931472, %v1198_v22  ;;  %v920_v38 = vpop.f32.mrb[10].mxu1  ;;  %v737_v15 = vadd.f32 %v736_v37, %v1471_v29 }
  0xff   : > { %v1202_v33 = vpop.eup %1201  ;;  %1215 = vpow2.f32 %v408_v23  ;;  %v601_v34 = vmul.f32 1.442695, %v593_v24  ;;  %v402_v35 = vmul.f32 %v1492_v1, %v388_v25  ;;  %v390_v36 = vmul.f32 0.6931472, %v1200_v26  ;;  %v738_v43 = vpop.f32.mrb[11].mxu0 }
 0x100   : > { %v1204_v39 = vpop.eup %1203  ;;  %1217 = vpow2.f32 %v410_v27  ;;  %v603_v40 = vmul.f32 1.442695, %v594_v28  ;;  %v595_v41 = vmul.f32 %v582_v31, %v1492_v1  ;;  %v584_v42 = vmul.f32 0.6931472, %v1202_v33  ;;  %v922_v44 = vpop.f32.mrb[11].mxu1 }
 0x101   : > { %v1206_v45 = vpop.eup %1205  ;;  %1219 = vpow2.f32 %v601_v34  ;;  %v412_v46 = vmul.f32 1.442695, %v402_v35  ;;  %v403_v47 = vmul.f32 %v1492_v1, %v390_v36  ;;  %v586_v48 = vmul.f32 0.6931472, %v1204_v39  ;;  %v742_v49 = vpop.f32.mrb[12].mxu0 }
 0x102   : > { %v926_v50 = vpop.f32.mrb[12].mxu1  ;;  %v1208_v51 = vpop.eup %1207  ;;  %1221 = vpow2.f32 %v603_v40  ;;  %v605_v53 = vmul.f32 1.442695, %v595_v41  ;;  %v596_v54 = vmul.f32 %v584_v42, %v1492_v1  ;;  %v394_v56 = vmul.f32 0.6931472, %v1206_v45 }
 0x103   : > { %v744_v57 = vpop.f32.mrb[13].mxu0  ;;  %v1515_v58 = vpop.f32.mrb[13].mxu1  ;;  %1223 = vpow2.f32 %v412_v46  ;;  %v414_v59 = vmul.f32 1.442695, %v403_v47  ;;  %v597_v60 = vmul.f32 %v586_v48, %v1492_v1  ;;  %v588_v61 = vmul.f32 0.6931472, %v1208_v51 }
 0x104   : > { %v1210_v62 = vpop.eup %1209  ;;  %1225 = vpow2.f32 %v605_v53  ;;  %v607_v63 = vmul.f32 1.442695, %v596_v54  ;;  %v405_v2 = vmul.f32 %v1492_v1, %v394_v56  ;;  %v917_v23 = vadd.f32 %v1500_v16, %v1465_v18 }
 0x105   : > { %1227 = vpow2.f32 %v414_v59  ;;  %v609_v4 = vmul.f32 1.442695, %v597_v60  ;;  %v598_v5 = vmul.f32 %v588_v61, %v1492_v1  ;;  %v590_v6 = vmul.f32 0.6931472, %v1210_v62  ;;  %v748_v7 = vpop.f32.mrb[14].mxu0  ;;  %v932_v8 = vpop.f32.mrb[14].mxu1 }
 0x106   : > { %v1212_v9 = vpop.eup %1211  ;;  %1229 = vpow2.f32 %v607_v63  ;;  %v750_v19 = vpop.f32.mrb[15].mxu0  ;;  %v418_v22 = vmul.f32 1.442695, %v405_v2  ;;  %v937_v28 = vmax.f32 %v1504_v21, 1e-06  ;;  %v921_v31 = vadd.f32 %v920_v38, %v1471_v29 }
 0x107   : > { %v1214_v12 = vpop.eup %1213  ;;  %1231 = vpow2.f32 %v609_v4  ;;  %v611_v13 = vmul.f32 1.442695, %v598_v5  ;;  %v599_v17 = vmul.f32 %v590_v6, %v1492_v1  ;;  %v592_v14 = vmul.f32 0.6931472, %v1212_v9  ;;  %v1525_v20 = vpop.f32.mrb[15].mxu1 }
 0x108   : > { %1233 = vlog2.f32 %v382_v3  ;;  %v754_v34 = vmax.f32 %v733_v11, 1e-06  ;;  %v739_v35 = vadd.f32 %v738_v43, %v1471_v29  ;;  %v938_v16 = vmax.f32 %v917_v23, 1e-06 }
 0x109   : > { %v1216_v24 = vpop.eup %1215  ;;  %1235 = vpow2.f32 %v611_v13  ;;  %v613_v25 = vmul.f32 1.442695, %v599_v17  ;;  %v600_v26 = vmul.f32 %v592_v14, %v1492_v1  ;;  %v923_v36 = vadd.f32 %v922_v44, %v1471_v29 }
 0x10a   : > { %v1218_v27 = vpop.eup %1217  ;;  %1237 = vlog2.f32 %v753_v10  ;;  %v743_v39 = vadd.f32 %v742_v49, %v1473_v30  ;;  %v755_v40 = vmax.f32 %v737_v15, 1e-06  ;;  %v939_v21 = vmax.f32 %v921_v31, 1e-06 }
 0x10b   : > { %v1220_v32 = vpop.eup %1219  ;;  %1239 = vpow2.f32 %v613_v25  ;;  %v615_v33 = vmul.f32 1.442695, %v600_v26  ;;  %v927_v38 = vadd.f32 %v926_v50, %v1473_v30  ;;  %v745_v42 = vadd.f32 %v744_v57, %v1473_v30 }
 0x10c   : > { %v1222_v18 = vpop.eup %1221  ;;  %1241 = vpow2.f32 %v418_v22  ;;  %v756_v43 = vmax.f32 %v739_v35, 1e-06  ;;  %v940_v47 = vmax.f32 %v923_v36, 1e-06  ;;  %v757_v48 = vmax.f32 %v743_v39, 1e-06 }
 0x10d   : > { %v1224_v37 = vpop.eup %1223  ;;  %1243 = vpow2.f32 %v615_v33  ;;  %v929_v29 = vadd.f32 %v1515_v58, %v1473_v30  ;;  %v749_v49 = vadd.f32 %v748_v7, %v1484_v52  ;;  %v425_v51 = vadd.f32 %v1218_v27, %v1216_v24 }
 0x10e   : > { %v1226_v41 = vpop.eup %1225  ;;  %1245 = vlog2.f32 %v937_v28  ;;  %v941_v50 = vmax.f32 %v927_v38, 1e-06  ;;  %v758_v56 = vmax.f32 %v745_v42, 1e-06  ;;  %v933_v57 = vadd.f32 %v932_v8, %v1484_v52 }
 0x10f   : > { %v1228_v45 = vpop.eup %1227  ;;  %1247 = vlog2.f32 %v754_v34  ;;  %426 = vadd.xlane.f32.xlu0 %v425_v51  ;;  %v618_v60 = vadd.f32 %v1222_v18, %v1220_v32  ;;  %v392_v61 = vmul.f32 0.6931472, %v1214_v12  ;;  %v942_v62 = vmax.f32 %v929_v29, 1e-06 }
 0x110   : > { %v1230_v46 = vpop.eup %1229  ;;  %1249 = vlog2.f32 %v938_v16  ;;  %v428_v53 = vadd.f32 %v1228_v45, %v1224_v37  ;;  %v751_v63 = vadd.f32 %v750_v19, %v1484_v52  ;;  %v759_v5 = vmax.f32 %v749_v49, 1e-06 }
 0x111   : > { %v1232_v44 = vpop.eup %1231  ;;  %1251 = vlog2.f32 %v755_v40  ;;  %v621_v30 = vadd.f32 %v1230_v46, %v1226_v41  ;;  %v935_v6 = vadd.f32 %v1525_v20, %v1484_v52  ;;  %v943_v8 = vmax.f32 %v933_v57, 1e-06 }
 0x112   : > { %v1541_v54 = vpop.eup %1233  ;;  %1253 = vlog2.f32 %v939_v21  ;;  %429 = vadd.xlane.f32.xlu1 %v428_v53  ;;  %v404_v9 = vmul.f32 %v1492_v1, %v392_v61  ;;  %v760_v13 = vmax.f32 %v751_v63, 1e-06  ;;  %v1555_v33 = vadd.f32 %v1486_v55, %v1484_v52 }
 0x113   : > { %v1236_v59 = vpop.eup %1235  ;;  %1255 = vlog2.f32 %v756_v43  ;;  %619 = vadd.xlane.f32.xlu0 %v618_v60  ;;  %v944_v20 = vmax.f32 %v935_v6, 1e-06 }
 0x114   : > { %v1238_v58 = vpop.eup %1237  ;;  %1257 = vlog2.f32 %v940_v47  ;;  %v624_v2 = vadd.f32 %v1236_v59, %v1232_v44  ;;  %v416_v25 = vmul.f32 1.442695, %v404_v9 }
 0x115   : > { %v1240_v3 = vpop.eup %1239  ;;  %v762_v4 = vmul.f32 0.6931472, %v1238_v58  ;;  %1259 = vlog2.f32 %v757_v48 }
 0x116   : > { %v1547_v7 = vpop.eup %1241  ;;  %1261 = vlog2.f32 %v941_v50 }
 0x117   : > { %v1244_v10 = vpop.eup %1243  ;;  %v777_v11 = vmul.f32 %v762_v4, %v1492_v1  ;;  %1263 = vlog2.f32 %v758_v56  ;;  %622 = vadd.xlane.f32.xlu0 %v621_v30 }
 0x118   : > { %v1246_v12 = vpop.eup %1245  ;;  %1265 = vlog2.f32 %v942_v62  ;;  %v627_v17 = vadd.f32 %v1244_v10, %v1240_v3 }
 0x119   : > { %v1248_v14 = vpop.eup %1247  ;;  %v785_v19 = vmul.f32 1.442695, %v777_v11  ;;  %v946_v22 = vmul.f32 0.6931472, %v1246_v12  ;;  %1267 = vlog2.f32 %v759_v5 }
 0x11a   : > { %v1250_v23 = vpop.eup %1249  ;;  %v764_v24 = vmul.f32 0.6931472, %v1248_v14  ;;  %1269 = vlog2.f32 %v943_v8  ;;  %v381_v14 = vmax.f32 %v1555_v33, 1e-06 }
 0x11b   : > { %v1252_v26 = vpop.eup %1251  ;;  %1271 = vpow2.f32 %v785_v19  ;;  %v961_v15 = vmul.f32 %v946_v22, %v1492_v1  ;;  %v948_v27 = vmul.f32 0.6931472, %v1250_v23  ;;  %625 = vadd.xlane.f32.xlu0 %v624_v2 }
 0x11c   : > { %v1254_v28 = vpop.eup %1253  ;;  %v778_v31 = vmul.f32 %v764_v24, %v1492_v1  ;;  %v766_v32 = vmul.f32 0.6931472, %v1252_v26  ;;  %1273 = vlog2.f32 %v760_v13 }
 0x11d   : > { %v1256_v34 = vpop.eup %1255  ;;  %v969_v35 = vmul.f32 1.442695, %v961_v15  ;;  %v962_v18 = vmul.f32 %v948_v27, %v1492_v1  ;;  %v950_v16 = vmul.f32 0.6931472, %v1254_v28  ;;  %1275 = vlog2.f32 %v944_v20 }
 0x11e   : > { %v1258_v36 = vpop.eup %1257  ;;  %v787_v39 = vmul.f32 1.442695, %v778_v31  ;;  %v779_v37 = vmul.f32 %v766_v32, %v1492_v1  ;;  %v768_v40 = vmul.f32 0.6931472, %v1256_v34  ;;  %1277 = vpow2.f32 %v416_v25 }
 0x11f   : > { %v1260_v41 = vpop.eup %1259  ;;  %1279 = vpow2.f32 %v969_v35  ;;  %v971_v21 = vmul.f32 1.442695, %v962_v18  ;;  %v963_v38 = vmul.f32 %v950_v16, %v1492_v1  ;;  %v952_v42 = vmul.f32 0.6931472, %v1258_v36  ;;  %628 = vadd.xlane.f32.xlu0 %v627_v17 }
 0x120   : > { %v1262_v52 = vpop.eup %1261  ;;  %1281 = vpow2.f32 %v787_v39  ;;  %v789_v55 = vmul.f32 1.442695, %v779_v37  ;;  %v780_v45 = vmul.f32 %v768_v40, %v1492_v1  ;;  %v770_v43 = vmul.f32 0.6931472, %v1260_v41 }
 0x121   : > { %v1264_v46 = vpop.eup %1263  ;;  %1283 = vpow2.f32 %v971_v21  ;;  %v973_v47 = vmul.f32 1.442695, %v963_v38  ;;  %v964_v48 = vmul.f32 %v952_v42, %v1492_v1  ;;  %v954_v29 = vmul.f32 0.6931472, %v1262_v52 }
 0x122   : > { %v1266_v44 = vpop.eup %1265  ;;  %1285 = vpow2.f32 %v789_v55  ;;  %v791_v49 = vmul.f32 1.442695, %v780_v45  ;;  %v781_v51 = vmul.f32 %v770_v43, %v1492_v1  ;;  %v772_v53 = vmul.f32 0.6931472, %v1264_v46 }
 0x123   : > { %v1268_v50 = vpop.eup %1267  ;;  %1287 = vpow2.f32 %v973_v47  ;;  %v975_v56 = vmul.f32 1.442695, %v964_v48  ;;  %v965_v57 = vmul.f32 %v954_v29, %v1492_v1  ;;  %v956_v59 = vmul.f32 0.6931472, %v1266_v44 }
 0x124   : > { %v1270_v60 = vpop.eup %1269  ;;  %1289 = vpow2.f32 %v791_v49  ;;  %v793_v61 = vmul.f32 1.442695, %v781_v51  ;;  %v782_v30 = vmul.f32 %v772_v53, %v1492_v1  ;;  %v774_v58 = vmul.f32 0.6931472, %v1268_v50 }
 0x125   : > { %v1272_v62 = vpop.eup %1271  ;;  %1291 = vpow2.f32 %v975_v56  ;;  %v977_v63 = vmul.f32 1.442695, %v965_v57  ;;  %v966_v2 = vmul.f32 %v956_v59, %v1492_v1  ;;  %v958_v3 = vmul.f32 0.6931472, %v1270_v60 }
 0x126   : > { %v1274_v4 = vpop.eup %1273  ;;  %1293 = vpow2.f32 %v793_v61  ;;  %v795_v5 = vmul.f32 1.442695, %v782_v30  ;;  %v783_v6 = vmul.f32 %v774_v58, %v1492_v1  ;;  %v398_v35 = vmul.f32 0.6931472, %v1541_v54 }
 0x127   : > { %v1276_v8 = vpop.eup %1275  ;;  %1295 = vpow2.f32 %v977_v63  ;;  %v979_v9 = vmul.f32 1.442695, %v966_v2  ;;  %v967_v10 = vmul.f32 %v958_v3, %v1492_v1  ;;  %v776_v11 = vmul.f32 0.6931472, %v1274_v4 }
 0x128   : > { %v1278_v12 = vpop.eup %1277  ;;  %1297 = vpow2.f32 %v795_v5  ;;  %v797_v13 = vmul.f32 1.442695, %v783_v6  ;;  %v960_v17 = vmul.f32 0.6931472, %v1276_v8  ;;  %v407_v40 = vmul.f32 %v1492_v1, %v398_v35 }
 0x129   : > { %v1280_v19 = vpop.eup %1279  ;;  %1299 = vpow2.f32 %v979_v9  ;;  %v981_v22 = vmul.f32 1.442695, %v967_v10  ;;  %v784_v20 = vmul.f32 %v776_v11, %v1492_v1  ;;  %v431_v23 = vadd.f32 %v1278_v12, %v1547_v7  ;;  %v617_v12 = vld [vmem:[#allocation2 + $0x1] sm:$0x1] }
 0x12a   : > { %v1282_v24 = vpop.eup %1281  ;;  %1301 = vpow2.f32 %v797_v13  ;;  %v968_v25 = vmul.f32 %v960_v17, %v1492_v1  ;;  %v422_v45 = vmul.f32 1.442695, %v407_v40  ;;  %v441_v57 = vlaneseq }
 0x12b   : > { %v1284_v26 = vpop.eup %1283  ;;  %1303 = vpow2.f32 %v981_v22  ;;  %v799_v15 = vmul.f32 1.442695, %v784_v20  ;;  %432 = vadd.xlane.f32.xlu1 %v431_v23  ;;  %v802_v27 = vadd.f32 %v1282_v24, %v1272_v62 }
 0x12c   : > { %v1286_v28 = vpop.eup %1285  ;;  %v983_v31 = vmul.f32 1.442695, %v968_v25  ;;  %1305 = vlog2.f32 %v381_v14  ;;  %v986_v32 = vadd.f32 %v1284_v26, %v1280_v19  ;;  %v444_v58 = vshrl.u32 %v441_v57, 7 }
 0x12d   : > { %v1288_v33 = vpop.eup %1287  ;;  %1307 = vpow2.f32 %v799_v15 }
 0x12e   : > { %v1290_v34 = vpop.eup %1289  ;;  %1309 = vpow2.f32 %v983_v31 }
 0x12f   : > { %v1292_v7 = vpop.eup %1291  ;;  %v805_v18 = vadd.f32 %v1290_v34, %v1286_v28  ;;  %1311 = vpow2.f32 %v422_v45 }
 0x130   : > { %v1294_v16 = vpop.eup %1293  ;;  %v989_v36 = vadd.f32 %v1292_v7, %v1288_v33  ;;  %1313 = vrcp.f32 %v1492_v1 }
 0x131   : > { %v1296_v39 = vpop.eup %1295  ;;  %806 = vadd.xlane.f32.xlu0 %v805_v18 }
 0x132   : > { %v1298_v37 = vpop.eup %1297 }
 0x133   : > { %v1300_v41 = vpop.eup %1299  ;;  %v808_v21 = vadd.f32 %v1298_v37, %v1294_v16 }
 0x134   : > { %v1302_v38 = vpop.eup %1301  ;;  %v992_v42 = vadd.f32 %v1300_v41, %v1296_v39 }
 0x135   : > { %v1304_v52 = vpop.eup %1303  ;;  %990 = vadd.xlane.f32.xlu0 %v989_v36 }
 0x136   : > { %v1306_v55 = vpop.eup %1305 }
 0x137   : > { %v1308_v43 = vpop.eup %1307  ;;  %v396_v54 = vmul.f32 0.6931472, %v1306_v55 }
 0x138   : > { %v1310_v46 = vpop.eup %1309  ;;  %v811_v47 = vadd.f32 %v1308_v43, %v1302_v38 }
 0x139   : > { %v406_v48 = vmul.f32 %v1492_v1, %v396_v54  ;;  %993 = vadd.xlane.f32.xlu0 %v992_v42  ;;  %v995_v29 = vadd.f32 %v1310_v46, %v1304_v52  ;;  %v1312_v49 = vpop.eup %1311  ;;  %v442_v1 = vand.u32 127, %v441_v57 }
 0x13a   : > { %v1314_v51 = vpop.eup %1313 }
 0x13b   : > { %v420_v44 = vmul.f32 1.442695, %v406_v48  ;;  %1153 = vpush %v1314_v51  ;;  %v447_v60 = vadd.s32 4294967288, %v442_v1  ;;  %v454_v61 = vadd.s32 4294967280, %v442_v1  ;;  %v461_v63 = vadd.s32 4294967272, %v442_v1 }
 0x13c   : > { %v445_v4 = vsub.s32 %v442_v1, %v444_v58 }
 0x13d   : > { %1315 = vpow2.f32 %v420_v44  ;;  %996 = vadd.xlane.f32.xlu0 %v995_v29  ;;  %v450_v62 = vsub.s32 %v447_v60, %v444_v58  ;;  %v457_v2 = vsub.s32 %v454_v61, %v444_v58  ;;  %v464_v9 = vsub.s32 %v461_v63, %v444_v58  ;;  %v801_v29 = vld [vmem:[#allocation2 + $0x2] sm:$0x1] }
 0x147   : > { %v1316_v53 = vpop.eup %1315 }
 0x148   : > { %v434_v50 = vadd.f32 %v1316_v53, %v1312_v49 }
 0x14a   : > { %435 = vadd.xlane.f32.xlu1 %v434_v50 }
 0x14e   : > { %803 = vadd.xlane.f32.xlu1 %v802_v27 }
 0x152   : > { %987 = vadd.xlane.f32.xlu1 %v986_v32  ;;  %v424_v32 = vld [vmem:[#allocation2] sm:$0x1] }
 0x156   : > { %809 = vadd.xlane.f32.xlu1 %v808_v21  ;;  %v985_v21 = vld [vmem:[#allocation2 + $0x3] sm:$0x1] }
 0x15a   : > { %812 = vadd.xlane.f32.xlu1 %v811_v47 }
 0x16c   : > { %s1154_s16 = spop %1153 }
 0x16d   : > { %v1034_v57 = vstv %s1154_s16 }
 0x19c   : > { %v427_v56 = vpop.xlane.xlu0 %426 }
 0x19d   : > { %v446_v26 = vrot.slane %v427_v56, %v445_v4 }
 0x19f   : > { %v430_v19 = vpop.xlane.xlu1 %429 }
 0x1a0   : > { %v620_v59 = vpop.xlane.xlu0 %619  ;;  %v451_v24 = vrot.slane %v430_v19, %v450_v62 }
 0x1a1   : > { %v637_v8 = vrot.slane %v620_v59, %v445_v4 }
 0x1a2   : > { %v453_v28 = vsel %vm452_vm3, %v451_v24, %v446_v26 }
 0x1a4   : > { %v623_v30 = vpop.xlane.xlu0 %622 }
 0x1a5   : > { %v641_v5 = vrot.slane %v623_v30, %v450_v62 }
 0x1a7   : > { %v642_v10 = vsel %vm452_vm3, %v641_v5, %v637_v8 }
 0x1a8   : > { %v626_v3 = vpop.xlane.xlu0 %625 }
 0x1a9   : > { %v646_v6 = vrot.slane %v626_v3, %v457_v2 }
 0x1ab   : > { %v647_v13 = vsel %vm459_vm4, %v646_v6, %v642_v10 }
 0x1ac   : > { %v629_v0 = vpop.xlane.xlu0 %628 }
 0x1ad   : > { %v651_v11 = vrot.slane %v629_v0, %v464_v9 }
 0x1af   : > { %v652_v17 = vsel %vm466_vm5, %v651_v11, %v647_v13 }
 0x1b0   : > { %v654_v14 = vadd.f32 %v652_v17, %v617_v12 }
 0x1b2   : > { %655 = vst.msk [vmem:[#allocation2 + $0x1] sm:$0x1] %vm470_vm6, %v654_v14 }
 0x1b8   : > { %v433_v20 = vpop.xlane.xlu1 %432 }
 0x1b9   : > { %v458_v25 = vrot.slane %v433_v20, %v457_v2 }
 0x1bb   : > { %v460_v33 = vsel %vm459_vm4, %v458_v25, %v453_v28 }
 0x1be   : > { %v807_v22 = vpop.xlane.xlu0 %806 }
 0x1bf   : > { %v825_v52 = vrot.slane %v807_v22, %v450_v62 }
 0x1c2   : > { %v991_v23 = vpop.xlane.xlu0 %990 }
 0x1c3   : > { %v1009_v16 = vrot.slane %v991_v23, %v450_v62 }
 0x1c6   : > { %v994_v27 = vpop.xlane.xlu0 %993 }
 0x1c7   : > { %v1014_v39 = vrot.slane %v994_v27, %v457_v2 }
 0x1ca   : > { %v997_v18 = vpop.xlane.xlu0 %996 }
 0x1cb   : > { %v1019_v40 = vrot.slane %v997_v18, %v464_v9 }
 0x1d7   : > { %v436_v15 = vpop.xlane.xlu1 %435 }
 0x1d8   : > { %v465_v31 = vrot.slane %v436_v15, %v464_v9 }
 0x1da   : > { %v467_v34 = vsel %vm466_vm5, %v465_v31, %v460_v33 }
 0x1db   : > { %v804_v35 = vpop.xlane.xlu1 %803  ;;  %v469_v7 = vadd.f32 %v467_v34, %v424_v32 }
 0x1dc   : > { %v821_v54 = vrot.slane %v804_v35, %v445_v4 }
 0x1dd   : > { %471 = vst.msk [vmem:[#allocation2] sm:$0x1] %vm470_vm6, %v469_v7 }
 0x1de   : > { %v826_v47 = vsel %vm452_vm3, %v825_v52, %v821_v54 }
 0x1df   : > { %v988_v36 = vpop.xlane.xlu1 %987 }
 0x1e0   : > { %v1005_v37 = vrot.slane %v988_v36, %v445_v4 }
 0x1e2   : > { %v1010_v41 = vsel %vm452_vm3, %v1009_v16, %v1005_v37 }
 0x1e3   : > { %v810_v38 = vpop.xlane.xlu1 %809  ;;  %v1015_v42 = vsel %vm459_vm4, %v1014_v39, %v1010_v41 }
 0x1e4   : > { %v1020_v55 = vsel %vm466_vm5, %v1019_v40, %v1015_v42  ;;  %v830_v45 = vrot.slane %v810_v38, %v457_v2 }
 0x1e5   : > { %v1022_v43 = vadd.f32 %v1020_v55, %v985_v21 }
 0x1e6   : > { %v831_v44 = vsel %vm459_vm4, %v830_v45, %v826_v47 }
 0x1e7   : > { %v813_v46 = vpop.xlane.xlu1 %812  ;;  %1023 = vst.msk [vmem:[#allocation2 + $0x3] sm:$0x1] %vm470_vm6, %v1022_v43 }
 0x1e8   : > { %v835_v48 = vrot.slane %v813_v46, %v464_v9 }
 0x1ea   : > { %v836_v49 = vsel %vm466_vm5, %v835_v48, %v831_v44 }
 0x1eb   : > { %v838_v51 = vadd.f32 %v836_v49, %v801_v29 }
 0x1ed   : > { %839 = vst.msk [vmem:[#allocation2 + $0x2] sm:$0x1] %vm470_vm6, %v838_v51 }
 0x1f4   : > { %v1027_v53 = vld [vmem:[#allocation2] sm:$0xf] }
 0x1f5   : > { %v1028_v50 = vmul.f32 0.00390625, %v1027_v53 }
 0x1f7   : > { %1317 = vlog2.f32 %v1028_v50 }
 0x201   : > { %v1318_v56 = vpop.eup %1317 }
 0x202   : > { %v1030_v59 = vmul.f32 0.6931472, %v1318_v56 }
 0x204   : > { %v1035_v1 = vmul.f32 %v1034_v57, %v1030_v59 }
 0x206   : > { %v1036_v60 = vmul.f32 1.442695, %v1035_v1 }
 0x208   : > { %1319 = vpow2.f32 %v1036_v60 }
 0x212   : > { %v1320_v61 = vpop.eup %1319 }
 0x213   : > { %v1038_v30 = vmul.f32 %v1320_v61, %v1320_v61 }
 0x215   : > { %v1040_v58 = vsel %vm234_vm2, %v1038_v30, 0.0 }
 0x216   : > { %1041 = vadd.xlane.f32.xlu1 %v1040_v58 }
 0x2a3   : > { %v1042_v62 = vpop.xlane.xlu1 %1041 }
 0x2a4   : > { %v1043_v63 = vmax.f32 %v1042_v62, 1e-24 }
 0x2a6   : > { %1321 = vrsqrt.f32 %v1043_v63 }
 0x2b0   : > { %v1322_v2 = vpop.eup %1321 }
 0x2b1   : > { %v1045_v3 = vmul.f32 %v1322_v2, %v1320_v61 }
 0x2b3   : > { %1046 = vst.msk [vmem:[%s229_s23] sm:$0xf] %vm234_vm2, %v1045_v3 }
 0x2b4 PF: > { %s15_s19 = sadd.s32 1, %s1345_s19   ;;  %s1615_s17 = smov %s1341_s18 }
 0x2b5   : > { %p12_p6 = scmp.ge.s32.totalorder %s15_s19, 4   ;;  %s1616_s18 = smov %s1618_s3 }
 0x2b7   :  { %14 = sbr.rel (!%p12_p6) target bundleno = 2 (0x2), region = 77 }

</bundles_post_ra>
